<compile_context>
chip_gen: v5e
topology: v5e:2x2
jax: 0.10.0
libtpu: 0.0.40
codegen_flags: <defaults>
</compile_context>

<pallas_src>
import functools
import math

import jax
import jax.numpy as jnp
from jax import lax
from jax.experimental import pallas as pl
from jax.experimental.pallas import tpu as pltpu


def _round_up(x, m):
    return (x + m - 1) // m * m


def _lane_dense_factor(c, itemsize):
    """k such that k*C is a multiple of 128 (full lane utilization).
    Falls back to k=1 when C is already lane-exact or a dense row would be
    unreasonably wide."""
    if c % 128 == 0:
        return 1
    k = 128 // math.gcd(c, 128)
    if k * c * itemsize > 256 * 1024:
        return 1
    return k


def _pick_tile_m(m, kc, itemsize_max, itemsize_min, per_buffer_bytes):
    """Rows per block: sized by bytes (~per_buffer_bytes per pipeline buffer),
    rounded down to the narrow dtype's native sublane packing (8/16/32)."""
    sublane = max(8, 32 // max(1, itemsize_min))
    row_bytes = max(1, kc * itemsize_max)
    t = per_buffer_bytes // row_bytes
    t = max(sublane, (t // sublane) * sublane)
    if t >= m:
        return m  # single full-extent block (legal even if m % 8 != 0)
    return t


def _f1_sums_kernel(y_pred_ref, y_true_ref, out_ref, acc_tp, acc_sp, acc_st, *,
                    m_rows, tile_m, steps_per_core, needs_mask):
    i = pl.program_id(1)

    @pl.when(i == 0)
    def _init():
        acc_tp[...] = jnp.zeros_like(acc_tp)
        acc_sp[...] = jnp.zeros_like(acc_sp)
        acc_st[...] = jnp.zeros_like(acc_st)

    yp = y_pred_ref[...].astype(jnp.float32)
    yt = y_true_ref[...].astype(jnp.float32)
    kc = yp.shape[1]

    def accumulate(yp, yt):
        prod = yt * yp  # single per-element multiply; fp/fn derived later
        if tile_m % 8 == 0:
            # Fold TILE_M -> 8 sublanes with pure vreg adds; the cross-sublane
            # (XLU) reduce happens once, in finalize.
            acc_tp[...] += jnp.sum(prod.reshape(tile_m // 8, 8, kc), axis=0)
            acc_sp[...] += jnp.sum(yp.reshape(tile_m // 8, 8, kc), axis=0)
            acc_st[...] += jnp.sum(yt.reshape(tile_m // 8, 8, kc), axis=0)
        else:
            # Tiny-M path (single full-extent block with M not 8-aligned).
            acc_tp[0:1, :] += jnp.sum(prod, axis=0, keepdims=True)
            acc_sp[0:1, :] += jnp.sum(yp, axis=0, keepdims=True)
            acc_st[0:1, :] += jnp.sum(yt, axis=0, keepdims=True)

    if needs_mask:
        # Global block index for this core's slice of the block range.
        b = pl.program_id(0) * steps_per_core + i
        valid = m_rows - b * tile_m

        @pl.when(valid >= tile_m)
        def _fast():
            accumulate(yp, yt)

        @pl.when(valid < tile_m)
        def _ragged():
            # Ragged / fully-OOB block: OOB rows hold stale VMEM, so use a
            # select (not a multiply) so NaN garbage cannot propagate.
            row = lax.broadcasted_iota(jnp.int32, yp.shape, 0)
            ok = row < valid
            accumulate(jnp.where(ok, yp, 0.0), jnp.where(ok, yt, 0.0))
    else:
        accumulate(yp, yt)

    @pl.when(i == pl.num_programs(1) - 1)
    def _finalize():
        tp = jnp.sum(acc_tp[...], axis=0, keepdims=True)  # [1, KC]
        sp = jnp.sum(acc_sp[...], axis=0, keepdims=True)  # per-col tp + fp
        st = jnp.sum(acc_st[...], axis=0, keepdims=True)  # per-col tp + fn
        out_ref[...] = jnp.concatenate([tp, sp, st], axis=0)[None]


def f1_loss(y_pred, y_true, epsilon=1e-7, per_buffer_bytes=2 * 1024 * 1024,
            num_parallel=2):
    """1 - mean_c(F1_c), with per-class confusion stats summed over dim 0."""
    assert y_pred.shape == y_true.shape and y_pred.ndim == 2
    n, c = y_pred.shape
    assert n > 0 and c > 0
    itemsize_p = jnp.dtype(y_pred.dtype).itemsize
    itemsize_t = jnp.dtype(y_true.dtype).itemsize
    itemsize_max = max(itemsize_p, itemsize_t)
    itemsize_min = min(itemsize_p, itemsize_t)

    # --- Lane-densify: (N, C) -> (M, k*C) with k*C % 128 == 0. ---
    k = _lane_dense_factor(c, itemsize_max)
    kc = k * c
    n_pad = _round_up(n, k)
    if n_pad != n:
        # Zero rows add nothing to tp / sum(pred) / sum(true).
        # TODO(synk): for huge N with N % k != 0, slice the dense prefix and
        # reduce the < k tail rows in the wrapper to avoid this pad copy.
        y_pred = jnp.pad(y_pred, ((0, n_pad - n), (0, 0)))
        y_true = jnp.pad(y_true, ((0, n_pad - n), (0, 0)))
    m = n_pad // k
    yp2 = y_pred.reshape(m, kc)   # contiguous row-major reshape: no copy
    yt2 = y_true.reshape(m, kc)

    # --- Tiling / grid ---
    tile_m = _pick_tile_m(m, kc, itemsize_max, itemsize_min, per_buffer_bytes)
    nblocks = pl.cdiv(m, tile_m)
    P = max(1, min(num_parallel, nblocks))   # parallel (megacore) splits
    spc = pl.cdiv(nblocks, P)                # sequential steps per core
    needs_mask = (P * spc * tile_m) != m

    if P * spc > nblocks:
        # Some steps run past the last block: clamp and let the in-kernel
        # validity mask zero them out.
        def in_index_map(p, i):
            return (jnp.minimum(p * spc + i, nblocks - 1), 0)
    else:
        def in_index_map(p, i):
            return (p * spc + i, 0)

    kernel = functools.partial(
        _f1_sums_kernel, m_rows=m, tile_m=tile_m, steps_per_core=spc,
        needs_mask=needs_mask)

    bytes_in = m * kc * (itemsize_p + itemsize_t)
    cost = pl.CostEstimate(flops=4 * m * kc, transcendentals=0,
                           bytes_accessed=bytes_in + P * 3 * kc * 4)

    partials = pl.pallas_call(
        kernel,
        out_shape=jax.ShapeDtypeStruct((P, 3, kc), jnp.float32),
        grid_spec=pltpu.PrefetchScalarGridSpec(
            num_scalar_prefetch=0,
            grid=(P, spc),
            in_specs=[
                pl.BlockSpec((tile_m, kc), in_index_map),
                pl.BlockSpec((tile_m, kc), in_index_map),
            ],
            out_specs=pl.BlockSpec((1, 3, kc), lambda p, i: (p, 0, 0)),
            scratch_shapes=[pltpu.VMEM((8, kc), jnp.float32)] * 3,
        ),
        compiler_params=pltpu.CompilerParams(
            dimension_semantics=("parallel", "arbitrary"),
            vmem_limit_bytes=32 * 1024 * 1024),
        cost_estimate=cost,
    )(yp2, yt2)

    # --- Finalize in the wrapper (tiny, C-length math) ---
    sums = jnp.sum(partials, axis=0)              # (3, k*C): merge cores
    sums = sums.reshape(3, k, c).sum(axis=1)      # (3, C): fold dense groups
    tp = sums[0]
    sum_pred = sums[1]                            # = tp + fp
    sum_true = sums[2]                            # = tp + fn
    precision = tp / (sum_pred + epsilon)
    recall = tp / (sum_true + epsilon)
    f1 = 2.0 * precision * recall / (precision + recall + epsilon)
    f1 = jnp.clip(f1, epsilon, 1.0 - epsilon)
    return 1.0 - jnp.mean(f1)


def f1_loss_ref(y_pred, y_true, epsilon=1e-7):
    # Pure-JAX reference mirroring the PyTorch forward exactly.
    # (The PyTorch module's `tn` is dead code and intentionally omitted.)
    y_pred = y_pred.astype(jnp.float32)
    y_true = y_true.astype(jnp.float32)
    tp = (y_true * y_pred).sum(axis=0)
    fp = ((1 - y_true) * y_pred).sum(axis=0)
    fn = (y_true * (1 - y_pred)).sum(axis=0)
    precision = tp / (tp + fp + epsilon)
    recall = tp / (tp + fn + epsilon)
    f1 = 2 * (precision * recall) / (precision + recall + epsilon)
    f1 = jnp.clip(f1, epsilon, 1 - epsilon)
    return 1 - f1.mean()


if __name__ == "__main__":
    key = jax.random.PRNGKey(0)
    k1, k2 = jax.random.split(key)

    # Small multi-target shape: 1100 samples x 10 targets. C=10 lane-densifies
    # with k=64 (k*C = 640 lanes); N zero-pads 1100 -> 1152 -> M = 18 dense rows.
    n, c = 1100, 10
    y_pred = jax.nn.sigmoid(jax.random.normal(k1, (n, c), dtype=jnp.float32))
    y_true = (jax.random.uniform(k2, (n, c)) > 0.5).astype(jnp.float32)

    loss_ref = jax.block_until_ready(f1_loss_ref(y_pred, y_true))

    # Default byte-sized tiles -> single full-extent block, P=1.
    loss_big = jax.block_until_ready(f1_loss(y_pred, y_true))
    assert jnp.allclose(loss_big, loss_ref, atol=1e-5, rtol=1e-5), (loss_big, loss_ref)

    # Tiny buffer budget -> tile_m=8, 3 blocks split across a 2-way "parallel"
    # grid axis: exercises multi-step pipelining, the gated ragged-tile mask,
    # and a fully-OOB (clamped index_map) step.
    loss_small = jax.block_until_ready(
        f1_loss(y_pred, y_true, per_buffer_bytes=8 * 640 * 4))
    assert jnp.allclose(loss_small, loss_ref, atol=1e-5, rtol=1e-5), (loss_small, loss_ref)

    # bf16 streaming path (half the HBM bytes, 16-row sublane packing,
    # f32 accumulation in-kernel).
    loss_bf16 = jax.block_until_ready(
        f1_loss(y_pred.astype(jnp.bfloat16), y_true.astype(jnp.bfloat16),
                per_buffer_bytes=16 * 640 * 2))
    assert jnp.allclose(loss_bf16, loss_ref, atol=3e-2), (loss_bf16, loss_ref)

    print("KERNEL_OK")
</pallas_src>

<mosaic_0001>
module attributes {stable_mosaic.version = 11 : i64} {
  func.func @_f1_sums_kernel(%arg0: i32, %arg1: i32, %arg2: memref<18x640xf32, #tpu.memory_space<vmem>>, %arg3: memref<18x640xf32, #tpu.memory_space<vmem>>, %arg4: memref<1x3x640xf32, #tpu.memory_space<vmem>>, %arg5: memref<8x640xf32, #tpu.memory_space<vmem>>, %arg6: memref<8x640xf32, #tpu.memory_space<vmem>>, %arg7: memref<8x640xf32, #tpu.memory_space<vmem>>) attributes {dimension_semantics = [#tpu.dimension_semantics<parallel>, #tpu.dimension_semantics<arbitrary>], iteration_bounds = array<i64: 1, 1>, scalar_prefetch = 0 : i64, scratch_operands = 3 : i64, tpu.core_type = #tpu.core_type<tc>, window_params = [{transform_indices = @transform_0, window_bounds = array<i64: 18, 640>}, {transform_indices = @transform_1, window_bounds = array<i64: 18, 640>}, {transform_indices = @transform_2, window_bounds = array<i64: 1, 3, 640>}]} {
    %c0_i32 = arith.constant 0 : i32
    %0 = arith.cmpi eq, %arg1, %c0_i32 : i32
    %1 = arith.extui %0 : i1 to i32
    %c0_i32_0 = arith.constant 0 : i32
    %2 = arith.cmpi ne, %1, %c0_i32_0 : i32
    scf.if %2 {
      %cst_20 = arith.constant 0.000000e+00 : f32
      %24 = vector.broadcast %cst_20 : f32 to vector<8x640xf32>
      %c0_21 = arith.constant 0 : index
      %c0_22 = arith.constant 0 : index
      %25 = vector.load %arg5[%c0_21, %c0_22] : memref<8x640xf32, #tpu.memory_space<vmem>>, vector<8x640xf32>
      tpu.vector_store %arg5[%c0_21, %c0_22], %24 {strides = array<i32>} : memref<8x640xf32, #tpu.memory_space<vmem>>, vector<8x640xf32>,
      %cst_23 = arith.constant 0.000000e+00 : f32
      %26 = vector.broadcast %cst_23 : f32 to vector<8x640xf32>
      %c0_24 = arith.constant 0 : index
      %c0_25 = arith.constant 0 : index
      %27 = vector.load %arg6[%c0_24, %c0_25] : memref<8x640xf32, #tpu.memory_space<vmem>>, vector<8x640xf32>
      tpu.vector_store %arg6[%c0_24, %c0_25], %26 {strides = array<i32>} : memref<8x640xf32, #tpu.memory_space<vmem>>, vector<8x640xf32>,
      %cst_26 = arith.constant 0.000000e+00 : f32
      %28 = vector.broadcast %cst_26 : f32 to vector<8x640xf32>
      %c0_27 = arith.constant 0 : index
      %c0_28 = arith.constant 0 : index
      %29 = vector.load %arg7[%c0_27, %c0_28] : memref<8x640xf32, #tpu.memory_space<vmem>>, vector<8x640xf32>
      tpu.vector_store %arg7[%c0_27, %c0_28], %28 {strides = array<i32>} : memref<8x640xf32, #tpu.memory_space<vmem>>, vector<8x640xf32>,
    } else {
    }
    %c0 = arith.constant 0 : index
    %c0_1 = arith.constant 0 : index
    %3 = vector.load %arg2[%c0, %c0_1] : memref<18x640xf32, #tpu.memory_space<vmem>>, vector<18x640xf32>
    %c0_2 = arith.constant 0 : index
    %c0_3 = arith.constant 0 : index
    %4 = vector.load %arg3[%c0_2, %c0_3] : memref<18x640xf32, #tpu.memory_space<vmem>>, vector<18x640xf32>
    %5 = arith.mulf %4, %3 : vector<18x640xf32>
    %c0_4 = arith.constant 0 : index
    %c0_5 = arith.constant 0 : index
    %6 = vector.load %arg5[%c0_4, %c0_5] : memref<8x640xf32, #tpu.memory_space<vmem>>, vector<1x640xf32>
    %cst = arith.constant dense<0.000000e+00> : vector<640xf32>
    %7 = vector.multi_reduction <add>, %5, %cst [0] : vector<18x640xf32> to vector<640xf32>
    %8 = vector.shape_cast %7 : vector<640xf32> to vector<1x640xf32>
    %9 = arith.addf %6, %8 : vector<1x640xf32>
    %c0_6 = arith.constant 0 : index
    %c0_7 = arith.constant 0 : index
    %10 = vector.load %arg5[%c0_6, %c0_7] : memref<8x640xf32, #tpu.memory_space<vmem>>, vector<1x640xf32>
    tpu.vector_store %arg5[%c0_6, %c0_7], %9 {strides = array<i32>} : memref<8x640xf32, #tpu.memory_space<vmem>>, vector<1x640xf32>,
    %c0_8 = arith.constant 0 : index
    %c0_9 = arith.constant 0 : index
    %11 = vector.load %arg6[%c0_8, %c0_9] : memref<8x640xf32, #tpu.memory_space<vmem>>, vector<1x640xf32>
    %cst_10 = arith.constant dense<0.000000e+00> : vector<640xf32>
    %12 = vector.multi_reduction <add>, %3, %cst_10 [0] : vector<18x640xf32> to vector<640xf32>
    %13 = vector.shape_cast %12 : vector<640xf32> to vector<1x640xf32>
    %14 = arith.addf %11, %13 : vector<1x640xf32>
    %c0_11 = arith.constant 0 : index
    %c0_12 = arith.constant 0 : index
    %15 = vector.load %arg6[%c0_11, %c0_12] : memref<8x640xf32, #tpu.memory_space<vmem>>, vector<1x640xf32>
    tpu.vector_store %arg6[%c0_11, %c0_12], %14 {strides = array<i32>} : memref<8x640xf32, #tpu.memory_space<vmem>>, vector<1x640xf32>,
    %c0_13 = arith.constant 0 : index
    %c0_14 = arith.constant 0 : index
    %16 = vector.load %arg7[%c0_13, %c0_14] : memref<8x640xf32, #tpu.memory_space<vmem>>, vector<1x640xf32>
    %cst_15 = arith.constant dense<0.000000e+00> : vector<640xf32>
    %17 = vector.multi_reduction <add>, %4, %cst_15 [0] : vector<18x640xf32> to vector<640xf32>
    %18 = vector.shape_cast %17 : vector<640xf32> to vector<1x640xf32>
    %19 = arith.addf %16, %18 : vector<1x640xf32>
    %c0_16 = arith.constant 0 : index
    %c0_17 = arith.constant 0 : index
    %20 = vector.load %arg7[%c0_16, %c0_17] : memref<8x640xf32, #tpu.memory_space<vmem>>, vector<1x640xf32>
    tpu.vector_store %arg7[%c0_16, %c0_17], %19 {strides = array<i32>} : memref<8x640xf32, #tpu.memory_space<vmem>>, vector<1x640xf32>,
    %c0_i32_18 = arith.constant 0 : i32
    %21 = arith.cmpi eq, %arg1, %c0_i32_18 : i32
    %22 = arith.extui %21 : i1 to i32
    %c0_i32_19 = arith.constant 0 : i32
    %23 = arith.cmpi ne, %22, %c0_i32_19 : i32
    scf.if %23 {
      %c0_20 = arith.constant 0 : index
      %c0_21 = arith.constant 0 : index
      %24 = vector.load %arg5[%c0_20, %c0_21] : memref<8x640xf32, #tpu.memory_space<vmem>>, vector<8x640xf32>
      %cst_22 = arith.constant dense<0.000000e+00> : vector<640xf32>
      %25 = vector.multi_reduction <add>, %24, %cst_22 [0] : vector<8x640xf32> to vector<640xf32>
      %26 = vector.shape_cast %25 : vector<640xf32> to vector<1x640xf32>
      %c0_23 = arith.constant 0 : index
      %c0_24 = arith.constant 0 : index
      %27 = vector.load %arg6[%c0_23, %c0_24] : memref<8x640xf32, #tpu.memory_space<vmem>>, vector<8x640xf32>
      %cst_25 = arith.constant dense<0.000000e+00> : vector<640xf32>
      %28 = vector.multi_reduction <add>, %27, %cst_25 [0] : vector<8x640xf32> to vector<640xf32>
      %29 = vector.shape_cast %28 : vector<640xf32> to vector<1x640xf32>
      %c0_26 = arith.constant 0 : index
      %c0_27 = arith.constant 0 : index
      %30 = vector.load %arg7[%c0_26, %c0_27] : memref<8x640xf32, #tpu.memory_space<vmem>>, vector<8x640xf32>
      %cst_28 = arith.constant dense<0.000000e+00> : vector<640xf32>
      %31 = vector.multi_reduction <add>, %30, %cst_28 [0] : vector<8x640xf32> to vector<640xf32>
      %32 = vector.shape_cast %31 : vector<640xf32> to vector<1x640xf32>
      %33 = tpu.concatenate %26, %29, %32 in 0 : vector<1x640xf32>, vector<1x640xf32>, vector<1x640xf32> -> vector<3x640xf32>
      %34 = vector.shape_cast %33 : vector<3x640xf32> to vector<1x3x640xf32>
      %c0_29 = arith.constant 0 : index
      %c0_30 = arith.constant 0 : index
      %c0_31 = arith.constant 0 : index
      %35 = vector.load %arg4[%c0_29, %c0_30, %c0_31] : memref<1x3x640xf32, #tpu.memory_space<vmem>>, vector<1x3x640xf32>
      tpu.vector_store %arg4[%c0_29, %c0_30, %c0_31], %34 {strides = array<i32>} : memref<1x3x640xf32, #tpu.memory_space<vmem>>, vector<1x3x640xf32>,
    } else {
    }
    return
  }
  func.func @transform_0(%arg0: i32, %arg1: i32) -> (i32, i32) {
    %c1_i32 = arith.constant 1 : i32
    %0 = arith.muli %arg0, %c1_i32 : i32
    %1 = arith.addi %0, %arg1 : i32
    %c0_i32 = arith.constant 0 : i32
    %c0_i32_0 = arith.constant 0 : i32
    return %1, %c0_i32 : i32, i32
  }
  func.func @transform_1(%arg0: i32, %arg1: i32) -> (i32, i32) {
    %c1_i32 = arith.constant 1 : i32
    %0 = arith.muli %arg0, %c1_i32 : i32
    %1 = arith.addi %0, %arg1 : i32
    %c0_i32 = arith.constant 0 : i32
    %c0_i32_0 = arith.constant 0 : i32
    return %1, %c0_i32 : i32, i32
  }
  func.func @transform_2(%arg0: i32, %arg1: i32) -> (i32, i32, i32) {
    %c0_i32 = arith.constant 0 : i32
    %c0_i32_0 = arith.constant 0 : i32
    %c0_i32_1 = arith.constant 0 : i32
    return %arg0, %c0_i32, %c0_i32_0 : i32, i32, i32
  }
}

</mosaic_0001>

<bundles_post_ra>
// kernel: tpu_custom_call.1
= control target key start
LH: loop header
LB: loop body
LE: loop exit
PB: predicated region body
PF: predicated region fallthrough
CT: control target
= control target key end

     0   :  { %7 = vsyncpa [#allocation6], 0  ;;  %s727_s0 = inlined_call_operand.hbm [shape: f32[18,640], index: 0, kind: input, shape index: {}]   ;;  %s728_s1 = inlined_call_operand.hbm [shape: f32[18,640], index: 1, kind: input, shape index: {}]   ;;  %s729_s2 = inlined_call_operand.vmem [shape: f32[1,3,640], index: 2, kind: output, shape index: {}]  }
   0x1   :  { %s18_s11 = sshll.u32 %s727_s0, 4  ;;  %s19_s11 = int_to_ptr.hbm [resolvable:$true] %s18_s11 }
   0x2   :  { %8 = vsyncpa [#allocation8], 0  ;;  %s519_s12 = smov [#allocation5]   ;;  %s36_s16 = sshll.u32 %s728_s1, 4  ;;  %s37_s16 = int_to_ptr.hbm [resolvable:$true] %s36_s16 }
   0x3   :  { %s20_s13 = sshll.u32 %s519_s12, 4  ;;  %s520_s17 = smov 640   ;;  %s21_s13 = int_to_ptr.vmem [resolvable:$true] %s20_s13 }
   0x4   :  { %s521_s18 = smov 40   ;;  %s522_s19 = smov [#allocation7]  }
   0x5   :  { %26 = dma.hbm_to_vmem [thread:$0]  %s19_s11, 1920, %s21_s13, [#allocation6], %s520_s17, %s520_s17, %s521_s18  }
   0x6   :  { %s38_s20 = sshll.u32 %s522_s19, 4  ;;  %s39_s20 = int_to_ptr.vmem [resolvable:$true] %s38_s20 }
   0x7   :  { %44 = dma.hbm_to_vmem [thread:$0]  %s37_s16, 1920, %s39_s20, [#allocation8], %s520_s17, %s520_s17, %s521_s18  }
   0x8   :  { %515 = dma.done.wait [#allocation6], 1920  }
   0x9   :  { %516 = vsyncadd [#allocation6], 4294965376 }
   0xa   :  { %517 = dma.done.wait [#allocation8], 1920  }
   0xb   :  { %518 = vsyncadd [#allocation8], 4294965376  ;;  %v523_v0 = vmov 0.0   ;;  %v76_v1 = vld [vmem:[#allocation5] sm:$0xff]  ;;  %v545_v2 = vld [vmem:[#allocation5 + $0x8] sm:$0xff]  ;;  %vm125_vm0 = vcmask 1041408   ;;  %v188_v32 = vlaneseq }
   0xc   :  { %66 = vst [vmem:[#allocation3] sm:$0xff] %v523_v0  ;;  %v547_v3 = vld [vmem:[#allocation5 + $0x10] sm:$0xff]  ;;  %v549_v4 = vld [vmem:[#allocation5 + $0x18] sm:$0xff]  ;;  %v551_v5 = vld [vmem:[#allocation5 + $0x20] sm:$0xff]  ;;  %vm179_vm1 = vcmask 1040384   ;;  %vm182_vm2 = vcmask 1043459  }
   0xd   :  { %61 = vst [vmem:[#allocation2] sm:$0xff] %v523_v0  ;;  %v553_v6 = vld [vmem:[#allocation5 + $0x28] sm:$0xff]  ;;  %v555_v7 = vld [vmem:[#allocation5 + $0x30] sm:$0xff]  ;;  %v557_v8 = vld [vmem:[#allocation5 + $0x38] sm:$0xff]  ;;  %vm184_vm3 = vcmask 1042432   ;;  %vm629_vm4 = vcmp.lt.s32.totalorder %v188_v32, 640 }
   0xe   :  { %62 = vst [vmem:[#allocation2 + $0x8] sm:$0xff] %v523_v0  ;;  %v559_v9 = vld [vmem:[#allocation5 + $0x40] sm:$0xff]  ;;  %v197_v10 = vadd.f32 %v553_v6, %v76_v1  ;;  %v562_v11 = vld [vmem:[#allocation5 + $0x48] sm:$0xff]  ;;  %v564_v12 = vld [vmem:[#allocation5 + $0x50] sm:$0x3]  ;;  %v206_v14 = vadd.f32 %v555_v7, %v545_v2  ;;  %v215_v15 = vadd.f32 %v557_v8, %v547_v3  ;;  %vm448_vm5 = vcmask 1043456  }
   0xf   :  { %63 = vst [vmem:[#allocation2 + $0x10] sm:$0xff] %v523_v0  ;;  %v566_v13 = vld [vmem:[#allocation5 + $0x58] sm:$0x3]  ;;  %v224_v16 = vadd.f32 %v559_v9, %v549_v4  ;;  %v574_v17 = vld [vmem:[#allocation5 + $0x60] sm:$0x3]  ;;  %v198_v19 = vsel %vm125_vm0, %v564_v12, 0.0  ;;  %v233_v20 = vadd.f32 %v562_v11, %v551_v5 }
  0x10   :  { %64 = vst [vmem:[#allocation2 + $0x18] sm:$0xff] %v523_v0  ;;  %v576_v18 = vld [vmem:[#allocation5 + $0x68] sm:$0x3]  ;;  %v582_v21 = vld [vmem:[#allocation5 + $0x70] sm:$0x3]  ;;  %v199_v22 = vadd.f32 %v198_v19, %v197_v10  ;;  %v207_v23 = vsel %vm125_vm0, %v566_v13, 0.0 }
  0x11   :  { %65 = vst [vmem:[#allocation2 + $0x20] sm:$0xff] %v523_v0  ;;  %v216_v24 = vsel %vm125_vm0, %v574_v17, 0.0  ;;  %v225_v25 = vsel %vm125_vm0, %v576_v18, 0.0  ;;  %v208_v26 = vadd.f32 %v207_v23, %v206_v14  ;;  %v234_v29 = vsel %vm125_vm0, %v582_v21, 0.0  ;;  %v91_v30 = vld [vmem:[#allocation7] sm:$0xff]  ;;  %v592_v31 = vld [vmem:[#allocation7 + $0x8] sm:$0xff] }
  0x12   :  { %67 = vst [vmem:[#allocation3 + $0x8] sm:$0xff] %v523_v0  ;;  %v217_v27 = vadd.f32 %v216_v24, %v215_v15  ;;  %v226_v28 = vadd.f32 %v225_v25, %v224_v16  ;;  %v200_v33 = vrot.slane %v199_v22, 4  ;;  %v235_v34 = vadd.f32 %v234_v29, %v233_v20  ;;  %v594_v35 = vld [vmem:[#allocation7 + $0x10] sm:$0xff]  ;;  %v596_v36 = vld [vmem:[#allocation7 + $0x18] sm:$0xff]  ;;  %v598_v37 = vld [vmem:[#allocation7 + $0x28] sm:$0xff] }
  0x13   :  { %68 = vst [vmem:[#allocation3 + $0x10] sm:$0xff] %v523_v0  ;;  %v209_v38 = vrot.slane %v208_v26, 4  ;;  %v600_v41 = vld [vmem:[#allocation7 + $0x30] sm:$0xff]  ;;  %v602_v42 = vld [vmem:[#allocation7 + $0x38] sm:$0xff]  ;;  %v262_v43 = vadd.f32 %v598_v37, %v91_v30  ;;  %v605_v46 = vld [vmem:[#allocation7 + $0x40] sm:$0xff]  ;;  %v609_v48 = vmul.f32 %v91_v30, %v76_v1 }
  0x14   :  { %69 = vst [vmem:[#allocation3 + $0x18] sm:$0xff] %v523_v0  ;;  %v218_v39 = vrot.slane %v217_v27, 4  ;;  %v227_v40 = vrot.slane %v226_v28, 4  ;;  %v201_v44 = vadd.f32 %v200_v33, %v199_v22  ;;  %v236_v45 = vrot.slane %v235_v34, 4  ;;  %v611_v52 = vld [vmem:[#allocation7 + $0x50] sm:$0x3] }
  0x15   :  { %70 = vst [vmem:[#allocation3 + $0x20] sm:$0xff] %v523_v0  ;;  %v271_v47 = vadd.f32 %v600_v41, %v592_v31  ;;  %v210_v49 = vadd.f32 %v209_v38, %v208_v26  ;;  %v280_v53 = vadd.f32 %v602_v42, %v594_v35  ;;  %v615_v56 = vld [vmem:[#allocation7 + $0x58] sm:$0x3]  ;;  %v617_v57 = vld [vmem:[#allocation7 + $0x60] sm:$0x3]  ;;  %v263_v58 = vsel %vm125_vm0, %v611_v52, 0.0 }
  0x16   :  { %71 = vst [vmem:[#allocation4] sm:$0xff] %v523_v0  ;;  %v219_v50 = vadd.f32 %v218_v39, %v217_v27  ;;  %v228_v51 = vadd.f32 %v227_v40, %v226_v28  ;;  %v202_v54 = vrot.slane %v201_v44, 2  ;;  %v237_v55 = vadd.f32 %v236_v45, %v235_v34  ;;  %v634_v38 = vld [vmem:[#allocation7 + $0x68] sm:$0x3]  ;;  %v95_v32 = vld [vmem:[#allocation7 + $0x20] sm:$0xff] }
  0x17   :  { %72 = vst [vmem:[#allocation4 + $0x8] sm:$0xff] %v523_v0  ;;  %v289_v59 = vadd.f32 %v605_v46, %v596_v36  ;;  %v211_v61 = vrot.slane %v210_v49, 2  ;;  %v272_v15 = vsel %vm125_vm0, %v615_v56, 0.0  ;;  %v281_v16 = vsel %vm125_vm0, %v617_v57, 0.0 }
  0x18   :  { %73 = vst [vmem:[#allocation4 + $0x10] sm:$0xff] %v523_v0  ;;  %v220_v62 = vrot.slane %v219_v50, 2  ;;  %v229_v63 = vrot.slane %v228_v51, 2  ;;  %v203_v10 = vadd.f32 %v202_v54, %v201_v44  ;;  %v238_v14 = vrot.slane %v237_v55, 2  ;;  %v105_v54 = vld [vmem:[#allocation7 + $0x70] sm:$0x3] }
  0x19   :  { %74 = vst [vmem:[#allocation4 + $0x18] sm:$0xff] %v523_v0  ;;  %v212_v19 = vadd.f32 %v211_v61, %v210_v49  ;;  %v273_v26 = vadd.f32 %v272_v15, %v271_v47  ;;  %v282_v27 = vadd.f32 %v281_v16, %v280_v53  ;;  %v100_v53 = vld [vmem:[#allocation7 + $0x48] sm:$0xff] }
  0x1a   :  { %75 = vst [vmem:[#allocation4 + $0x20] sm:$0xff] %v523_v0  ;;  %v264_v0 = vadd.f32 %v263_v58, %v262_v43  ;;  %v221_v20 = vadd.f32 %v220_v62, %v219_v50  ;;  %v230_v22 = vadd.f32 %v229_v63, %v228_v51  ;;  %v204_v24 = vrot.slane %v203_v10, 1 }
  0x1b   :  { %v623_v60 = vld [vmem:[#allocation3] ss:$8 sm:$0xf]  ;;  %v239_v25 = vadd.f32 %v238_v14, %v237_v55  ;;  %v213_v30 = vrot.slane %v212_v19, 1  ;;  %v274_v44 = vrot.slane %v273_v26, 4  ;;  %v283_v47 = vrot.slane %v282_v27, 4 }
  0x1c   :  { %v195_v1 = vld [vmem:[#allocation3] ss:$8 sm:$0x10]  ;;  %v265_v23 = vrot.slane %v264_v0, 4  ;;  %v222_v33 = vrot.slane %v221_v20, 1  ;;  %v231_v34 = vrot.slane %v230_v22, 1  ;;  %v205_v39 = vadd.f32 %v204_v24, %v203_v10 }
  0x1d   :  { %v196_v29 = vor.u32 %v195_v1, %v623_v60  ;;  %v240_v40 = vrot.slane %v239_v25, 1  ;;  %v214_v45 = vadd.f32 %v213_v30, %v212_v19  ;;  %v275_v58 = vadd.f32 %v274_v44, %v273_v26 }
  0x1e   :  { %v266_v43 = vadd.f32 %v265_v23, %v264_v0  ;;  %v223_v49 = vadd.f32 %v222_v33, %v221_v20  ;;  %v232_v50 = vadd.f32 %v231_v34, %v230_v22  ;;  %v290_v60 = vsel %vm125_vm0, %v634_v38, 0.0 }
  0x1f   :  { %v241_v51 = vadd.f32 %v240_v40, %v239_v25  ;;  %v247_v61 = vrot.slane %v214_v45, 7  ;;  %v284_v1 = vadd.f32 %v283_v47, %v282_v27  ;;  %v276_v15 = vrot.slane %v275_v58, 2 }
  0x20   :  { %v267_v55 = vrot.slane %v266_v43, 2  ;;  %v248_v62 = vrot.slane %v223_v49, 6  ;;  %v249_v63 = vrot.slane %v232_v50, 5  ;;  %v638_v0 = vld [vmem:[#allocation4] ss:$8 sm:$0xf]  ;;  %v291_v16 = vadd.f32 %v290_v60, %v289_v59 }
  0x21   :  { %v250_v10 = vrot.slane %v241_v51, 4  ;;  %v251_v19 = vsel %vm179_vm1, %v205_v39, %v247_v61  ;;  %v641_v20 = vld [vmem:[#allocation4] ss:$8 sm:$0x10]  ;;  %v285_v22 = vrot.slane %v284_v1, 2  ;;  %v298_v23 = vadd.f32 %v100_v53, %v95_v32 }
  0x22   :  { %v268_v14 = vadd.f32 %v267_v55, %v266_v43  ;;  %v299_v24 = vsel %vm125_vm0, %v105_v54, 0.0  ;;  %v252_v25 = vsel %vm125_vm0, %v251_v19, %v248_v62  ;;  %v277_v27 = vadd.f32 %v276_v15, %v275_v58 }
  0x23   :  { %v253_v26 = vsel %vm182_vm2, %v249_v63, %v250_v10  ;;  %v286_v34 = vadd.f32 %v285_v22, %v284_v1  ;;  %v292_v40 = vrot.slane %v291_v16, 4  ;;  %v300_v43 = vadd.f32 %v299_v24, %v298_v23 }
  0x24   :  { %v269_v30 = vrot.slane %v268_v14, 1  ;;  %v254_v33 = vsel %vm184_vm3, %v252_v25, %v253_v26  ;;  %v261_v39 = vor.u32 %v641_v20, %v638_v0  ;;  %v278_v44 = vrot.slane %v277_v27, 1 }
  0x25   :  { %v256_v59 = vadd.f32 %v254_v33, %v196_v29  ;;  %v107_v45 = vmul.f32 %v592_v31, %v545_v2  ;;  %v287_v50 = vrot.slane %v286_v34, 1  ;;  %v293_v47 = vadd.f32 %v292_v40, %v291_v16 }
  0x26   :  { %v270_v49 = vadd.f32 %v269_v30, %v268_v14  ;;  %v301_v51 = vrot.slane %v300_v43, 4  ;;  %v279_v55 = vadd.f32 %v278_v44, %v277_v27  ;;  %v108_v58 = vmul.f32 %v594_v35, %v547_v3 }
  0x27   :  { %257 = vst.msk [vmem:[#allocation3] ss:$8 sm:$0xf] %vm629_vm4, %v256_v59  ;;  %v109_v29 = vmul.f32 %v596_v36, %v549_v4  ;;  %v110_v60 = vmul.f32 %v95_v32, %v551_v5  ;;  %v288_v2 = vadd.f32 %v287_v50, %v286_v34  ;;  %v294_v31 = vrot.slane %v293_v47, 2 }
  0x28   :  { %258 = vst.msk [vmem:[#allocation3] ss:$8 sm:$0x10] %vm629_vm4, %v256_v59  ;;  %v302_v61 = vadd.f32 %v301_v51, %v300_v43  ;;  %v111_v62 = vmul.f32 %v598_v37, %v553_v6  ;;  %v312_v63 = vrot.slane %v279_v55, 7  ;;  %v112_v1 = vmul.f32 %v600_v41, %v555_v7 }
  0x29   :  { %v113_v3 = vmul.f32 %v602_v42, %v557_v8  ;;  %v116_v4 = vmul.f32 %v611_v52, %v564_v12  ;;  %v295_v5 = vadd.f32 %v294_v31, %v293_v47  ;;  %v114_v36 = vmul.f32 %v605_v46, %v559_v9 }
  0x2a   :  { %v303_v35 = vrot.slane %v302_v61, 2  ;;  %v117_v32 = vmul.f32 %v615_v56, %v566_v13  ;;  %v313_v10 = vrot.slane %v288_v2, 6  ;;  %v115_v6 = vmul.f32 %v100_v53, %v562_v11 }
  0x2b   :  { %v118_v7 = vmul.f32 %v617_v57, %v574_v17  ;;  %v119_v8 = vmul.f32 %v634_v38, %v576_v18  ;;  %v296_v37 = vrot.slane %v295_v5, 1  ;;  %v316_v12 = vsel %vm179_vm1, %v270_v49, %v312_v63 }
  0x2c   :  { %v304_v41 = vadd.f32 %v303_v35, %v302_v61  ;;  %v120_v42 = vmul.f32 %v105_v54, %v582_v21  ;;  %v124_v9 = vadd.f32 %v111_v62, %v609_v48  ;;  %v126_v46 = vsel %vm125_vm0, %v116_v4, 0.0 }
  0x2d   :  { %v134_v13 = vadd.f32 %v112_v1, %v107_v45  ;;  %v135_v52 = vsel %vm125_vm0, %v117_v32, 0.0  ;;  %v297_v11 = vadd.f32 %v296_v37, %v295_v5  ;;  %v143_v53 = vadd.f32 %v113_v3, %v108_v58 }
  0x2e   :  { %v305_v56 = vrot.slane %v304_v41, 1  ;;  %v144_v17 = vsel %vm125_vm0, %v118_v7, 0.0  ;;  %v127_v57 = vadd.f32 %v126_v46, %v124_v9  ;;  %v152_v38 = vadd.f32 %v114_v36, %v109_v29  ;;  %v362_v51 = vld [vmem:[#allocation3] sm:$0xff]  ;;  %v122_v7 = vld [vmem:[#allocation2] ss:$8 sm:$0x10] }
  0x2f   :  { %v136_v18 = vadd.f32 %v135_v52, %v134_v13  ;;  %v153_v14 = vsel %vm125_vm0, %v119_v8, 0.0  ;;  %v314_v16 = vrot.slane %v297_v11, 5  ;;  %v145_v21 = vadd.f32 %v144_v17, %v143_v53  ;;  %v366_v47 = vld [vmem:[#allocation3 + $0x20] sm:$0xff]  ;;  %v364_v11 = vld [vmem:[#allocation3 + $0x10] sm:$0xff] }
  0x30   :  { %v306_v15 = vadd.f32 %v305_v56, %v304_v41  ;;  %v161_v54 = vadd.f32 %v115_v6, %v110_v60  ;;  %v128_v48 = vrot.slane %v127_v57, 4  ;;  %v154_v22 = vadd.f32 %v153_v14, %v152_v38  ;;  %v363_v60 = vld [vmem:[#allocation3 + $0x8] sm:$0xff] }
  0x31   :  { %v137_v19 = vrot.slane %v136_v18, 4  ;;  %v162_v23 = vsel %vm125_vm0, %v120_v42, 0.0  ;;  %v317_v25 = vsel %vm125_vm0, %v316_v12, %v313_v10  ;;  %v146_v26 = vrot.slane %v145_v21, 4  ;;  %v121_v36 = vld [vmem:[#allocation2] ss:$8 sm:$0xf] }
  0x32   :  { %v315_v24 = vrot.slane %v306_v15, 4  ;;  %v163_v30 = vadd.f32 %v162_v23, %v161_v54  ;;  %v129_v27 = vadd.f32 %v128_v48, %v127_v57  ;;  %v155_v34 = vrot.slane %v154_v22, 4 }
  0x33   :  { %v138_v33 = vadd.f32 %v137_v19, %v136_v18  ;;  %v147_v43 = vadd.f32 %v146_v26, %v145_v21  ;;  %v391_v1 = vrot.slane %v366_v47, 4  ;;  %v367_v3 = vrot.slane %v362_v51, 4 }
  0x34   :  { %v318_v40 = vsel %vm182_vm2, %v314_v16, %v315_v24  ;;  %v164_v59 = vrot.slane %v163_v30, 4  ;;  %v130_v45 = vrot.slane %v129_v27, 2  ;;  %v156_v50 = vadd.f32 %v155_v34, %v154_v22  ;;  %v365_v16 = vld [vmem:[#allocation3 + $0x18] sm:$0xff] }
  0x35   :  { %v319_v44 = vsel %vm184_vm3, %v317_v25, %v318_v40  ;;  %v139_v49 = vrot.slane %v138_v33, 2  ;;  %v148_v58 = vrot.slane %v147_v43, 2  ;;  %v373_v20 = vrot.slane %v363_v60, 4 }
  0x36   :  { %v321_v55 = vadd.f32 %v319_v44, %v261_v39  ;;  %v165_v29 = vadd.f32 %v164_v59, %v163_v30  ;;  %v131_v2 = vadd.f32 %v130_v45, %v129_v27  ;;  %v157_v61 = vrot.slane %v156_v50, 2 }
  0x37   :  { %v140_v31 = vadd.f32 %v139_v49, %v138_v33  ;;  %v149_v62 = vadd.f32 %v148_v58, %v147_v43  ;;  %v392_v41 = vadd.f32 %v391_v1, %v366_v47  ;;  %v368_v12 = vadd.f32 %v367_v3, %v362_v51 }
  0x38   :  { %322 = vst.msk [vmem:[#allocation4] ss:$8 sm:$0xf] %vm629_vm4, %v321_v55  ;;  %v166_v63 = vrot.slane %v165_v29, 2  ;;  %v132_v4 = vrot.slane %v131_v2, 1  ;;  %v158_v0 = vadd.f32 %v157_v61, %v156_v50  ;;  %v374_v46 = vadd.f32 %v373_v20, %v363_v60 }
  0x39   :  { %323 = vst.msk [vmem:[#allocation4] ss:$8 sm:$0x10] %vm629_vm4, %v321_v55  ;;  %v141_v5 = vrot.slane %v140_v31, 1  ;;  %v150_v39 = vrot.slane %v149_v62, 1  ;;  %v123_v56 = vor.u32 %v122_v7, %v121_v36  ;;  %v393_v14 = vrot.slane %v392_v41, 2 }
  0x3a   :  { %v167_v35 = vadd.f32 %v166_v63, %v165_v29  ;;  %v133_v32 = vadd.f32 %v132_v4, %v131_v2  ;;  %v159_v6 = vrot.slane %v158_v0, 1  ;;  %v369_v15 = vrot.slane %v368_v12, 2 }
  0x3b   :  { %v142_v10 = vadd.f32 %v141_v5, %v140_v31  ;;  %v151_v8 = vadd.f32 %v150_v39, %v149_v62  ;;  %v375_v54 = vrot.slane %v374_v46, 2  ;;  %v379_v19 = vrot.slane %v364_v11, 4 }
  0x3c   :  { %v168_v37 = vrot.slane %v167_v35, 1  ;;  %v160_v42 = vadd.f32 %v159_v6, %v158_v0  ;;  %v385_v25 = vrot.slane %v365_v16, 4  ;;  %v394_v27 = vadd.f32 %v393_v14, %v392_v41 }
  0x3d   :  { %v175_v9 = vrot.slane %v142_v10, 7  ;;  %v176_v52 = vrot.slane %v151_v8, 6  ;;  %v370_v34 = vadd.f32 %v369_v15, %v368_v12  ;;  %v376_v43 = vadd.f32 %v375_v54, %v374_v46 }
  0x3e   :  { %v169_v13 = vadd.f32 %v168_v37, %v167_v35  ;;  %v177_v53 = vrot.slane %v160_v42, 5  ;;  %v380_v45 = vadd.f32 %v379_v19, %v364_v11  ;;  %v386_v50 = vadd.f32 %v385_v25, %v365_v16 }
  0x3f   :  { %v180_v17 = vsel %vm179_vm1, %v133_v32, %v175_v9  ;;  %v397_v57 = vld [vmem:[#allocation4] sm:$0xff]  ;;  %v398_v23 = vld [vmem:[#allocation4 + $0x8] sm:$0xff]  ;;  %v400_v26 = vld [vmem:[#allocation4 + $0x18] sm:$0xff]  ;;  %v395_v51 = vrot.slane %v394_v27, 1  ;;  %v371_v58 = vrot.slane %v370_v34, 1  ;;  %v377_v29 = vrot.slane %v376_v43, 1 }
  0x40   :  { %v178_v18 = vrot.slane %v169_v13, 4  ;;  %v181_v38 = vsel %vm125_vm0, %v180_v17, %v176_v52  ;;  %v401_v21 = vld [vmem:[#allocation4 + $0x20] sm:$0xff]  ;;  %v402_v48 = vrot.slane %v397_v57, 4  ;;  %v399_v40 = vld [vmem:[#allocation4 + $0x10] sm:$0xff]  ;;  %v408_v44 = vrot.slane %v398_v23, 4 }
  0x41   :  { %v426_v33 = vrot.slane %v401_v21, 4  ;;  %v420_v49 = vrot.slane %v400_v26, 4  ;;  %v414_v47 = vrot.slane %v399_v40, 4  ;;  %v381_v31 = vrot.slane %v380_v45, 2 }
  0x42   :  { %v183_v22 = vsel %vm182_vm2, %v177_v53, %v178_v18  ;;  %v403_v59 = vadd.f32 %v402_v48, %v397_v57  ;;  %v409_v2 = vadd.f32 %v408_v44, %v398_v23  ;;  %v387_v62 = vrot.slane %v386_v50, 2 }
  0x43   :  { %v185_v24 = vsel %vm184_vm3, %v181_v38, %v183_v22  ;;  %v427_v55 = vadd.f32 %v426_v33, %v401_v21  ;;  %v421_v61 = vadd.f32 %v420_v49, %v400_v26  ;;  %v415_v63 = vadd.f32 %v414_v47, %v399_v40 }
  0x44   :  { %v187_v30 = vadd.f32 %v185_v24, %v123_v56  ;;  %v404_v60 = vrot.slane %v403_v59, 2  ;;  %v703_v1 = vadd.f32 %v395_v51, %v394_v27  ;;  %v372_v4 = vadd.f32 %v371_v58, %v370_v34 }
  0x45   :  { %v428_v3 = vrot.slane %v427_v55, 2  ;;  %v378_v28 = vadd.f32 %v377_v29, %v376_v43  ;;  %v410_v39 = vrot.slane %v409_v2, 2  ;;  %v382_v36 = vadd.f32 %v381_v31, %v380_v45 }
  0x46   :  { %192 = vst.msk [vmem:[#allocation2] ss:$8 sm:$0xf] %vm629_vm4, %v187_v30  ;;  %v405_v20 = vadd.f32 %v404_v60, %v403_v59  ;;  %v422_v37 = vrot.slane %v421_v61, 2  ;;  %v388_v42 = vadd.f32 %v387_v62, %v386_v50  ;;  %v416_v9 = vrot.slane %v415_v63, 2 }
  0x47   :  { %193 = vst.msk [vmem:[#allocation2] ss:$8 sm:$0x10] %vm629_vm4, %v187_v30  ;;  %v429_v46 = vadd.f32 %v428_v3, %v427_v55  ;;  %v411_v53 = vadd.f32 %v410_v39, %v409_v2  ;;  %v383_v57 = vrot.slane %v382_v36, 1 }
  0x48   :  { %v423_v15 = vadd.f32 %v422_v37, %v421_v61  ;;  %v406_v21 = vrot.slane %v405_v20, 1  ;;  %v389_v48 = vrot.slane %v388_v42, 1  ;;  %v417_v24 = vadd.f32 %v416_v9, %v415_v63 }
  0x49   :  { %v430_v26 = vrot.slane %v429_v46, 1  ;;  %v412_v30 = vrot.slane %v411_v53, 1  ;;  %v384_v49 = vadd.f32 %v383_v57, %v382_v36 }
  0x4a   :  { %v424_v43 = vrot.slane %v423_v15, 1  ;;  %v407_v44 = vadd.f32 %v406_v21, %v405_v20  ;;  %v418_v55 = vrot.slane %v417_v24, 1  ;;  %v390_v2 = vadd.f32 %v389_v48, %v388_v42 }
  0x4b   :  { %v413_v29 = vadd.f32 %v412_v30, %v411_v53  ;;  %v431_v31 = vadd.f32 %v430_v26, %v429_v46 }
  0x4c   :  { %v425_v63 = vadd.f32 %v424_v43, %v423_v15  ;;  %v419_v36 = vadd.f32 %v418_v55, %v417_v24 }
  0x4d   :  { %v327_v5 = vld [vmem:[#allocation2] sm:$0xff]  ;;  %v328_v0 = vld [vmem:[#allocation2 + $0x8] sm:$0xff]  ;;  %v329_v35 = vld [vmem:[#allocation2 + $0x10] sm:$0xff] }
  0x4e   :  { %v331_v32 = vld [vmem:[#allocation2 + $0x20] sm:$0xff]  ;;  %v332_v10 = vrot.slane %v327_v5, 4  ;;  %v338_v6 = vrot.slane %v328_v0, 4  ;;  %v330_v7 = vld [vmem:[#allocation2 + $0x18] sm:$0xff]  ;;  %v344_v8 = vrot.slane %v329_v35, 4 }
  0x4f   :  { %v356_v41 = vrot.slane %v331_v32, 4  ;;  %v350_v12 = vrot.slane %v330_v7, 4 }
  0x50   :  { %v333_v13 = vadd.f32 %v332_v10, %v327_v5  ;;  %v339_v52 = vadd.f32 %v338_v6, %v328_v0  ;;  %v345_v11 = vadd.f32 %v344_v8, %v329_v35 }
  0x51   :  { %v357_v56 = vadd.f32 %v356_v41, %v331_v32  ;;  %v351_v17 = vadd.f32 %v350_v12, %v330_v7 }
  0x52   :  { %v334_v18 = vrot.slane %v333_v13, 2  ;;  %v340_v38 = vrot.slane %v339_v52, 2  ;;  %v346_v14 = vrot.slane %v345_v11, 2 }
  0x53   :  { %v358_v16 = vrot.slane %v357_v56, 2  ;;  %v352_v54 = vrot.slane %v351_v17, 2 }
  0x54   :  { %v335_v19 = vadd.f32 %v334_v18, %v333_v13  ;;  %v341_v22 = vadd.f32 %v340_v38, %v339_v52  ;;  %v347_v23 = vadd.f32 %v346_v14, %v345_v11 }
  0x55   :  { %v359_v25 = vadd.f32 %v358_v16, %v357_v56  ;;  %v353_v27 = vadd.f32 %v352_v54, %v351_v17 }
  0x56   :  { %v336_v33 = vrot.slane %v335_v19, 1  ;;  %v342_v34 = vrot.slane %v341_v22, 1  ;;  %v348_v40 = vrot.slane %v347_v23, 1 }
  0x57   :  { %v360_v59 = vrot.slane %v359_v25, 1  ;;  %v354_v45 = vrot.slane %v353_v27, 1 }
  0x58   :  { %v337_v50 = vadd.f32 %v336_v33, %v335_v19  ;;  %v343_v47 = vadd.f32 %v342_v34, %v341_v22  ;;  %v349_v51 = vadd.f32 %v348_v40, %v347_v23 }
  0x59   :  { %v361_v58 = vadd.f32 %v360_v59, %v359_v25  ;;  %v355_v60 = vadd.f32 %v354_v45, %v353_v27 }
  0x5a   :  { %v432_v61 = vsel %vm179_vm1, %v337_v50, %v372_v4  ;;  %v433_v62 = vsel %vm179_vm1, %v343_v47, %v378_v28  ;;  %v434_v0 = vsel %vm179_vm1, %v349_v51, %v384_v49 }
  0x5b   :  { %v436_v3 = vsel %vm179_vm1, %v361_v58, %v703_v1  ;;  %v438_v5 = vsel %vm125_vm0, %v433_v62, %v413_v29  ;;  %v435_v20 = vsel %vm179_vm1, %v355_v60, %v390_v2  ;;  %v437_v4 = vsel %vm125_vm0, %v432_v61, %v407_v44 }
  0x5c   :  { %v441_v39 = vsel %vm125_vm0, %v436_v3, %v431_v31  ;;  %v446_v35 = vrot.slane %v438_v5, 4  ;;  %v440_v32 = vsel %vm125_vm0, %v435_v20, %v425_v63  ;;  %v439_v10 = vsel %vm125_vm0, %v434_v0, %v419_v36 }
  0x5d   :  { %455 = vst [vmem:[%s729_s2 + $0x10] sm:$0x7] %v441_v39  ;;  %v447_v28 = vrot.slane %v440_v32, 4 }
  0x5e   :  { %v449_v1 = vsel %vm448_vm5, %v437_v4, %v446_v35 }
  0x5f   :  { %453 = vst [vmem:[%s729_s2] sm:$0x77] %v449_v1  ;;  %v450_v6 = vsel %vm448_vm5, %v439_v10, %v447_v28 }
  0x60   :  { %454 = vst [vmem:[%s729_s2 + $0x8] sm:$0x77] %v450_v6 }
  0x61   :  { %460 = vsyncpa [#allocation6], 1 }
  0x62   :  { %461 = vsyncpa [#allocation8], 1 }

</bundles_post_ra>
